<compile_context>
chip_gen: v6e
topology: v6e:2x2x1
jax: 0.10.0
libtpu: 0.0.40
codegen_flags: <defaults>
</compile_context>

<pallas_src>
import functools

import jax
import jax.numpy as jnp
from jax import lax
from jax.experimental import pallas as pl
from jax.experimental.pallas import tpu as pltpu

EPS = 1e-5
_LN2 = 0.6931471805599453


def _jsdiv_kernel(p_ref, q_ref, o_ref, *, n_rows, tile_rows, tiles_per_shard,
                  needs_mask):
    i = pl.program_id(1)   # tile-within-shard axis ("arbitrary": reduction)

    # Zero this shard's resident (8, D) accumulator block on its first step.
    @pl.when(i == 0)
    def _():
        o_ref[...] = jnp.zeros_like(o_ref)

    # Native-dtype DMA; f32 in-kernel math.
    p = p_ref[...].astype(jnp.float32)
    q = q_ref[...].astype(jnp.float32)

    # log((p+eps)/m) = log(p+eps) - log(p+q) + ln2 with m = (p+q)/2, hence
    #   p*log((p+eps)/m) + 0.5*q*log((q+eps)/m)
    #     = p*log(p+eps) + 0.5*q*log(q+eps) - (p + 0.5*q)*(log(p+q) - ln2)
    # -> no divide: EUP only runs logs, the rest is VPU FMAs. Exact arithmetic.
    log_pq = jnp.log(p + q)
    contrib = (p * jnp.log(p + EPS)
               + 0.5 * q * jnp.log(q + EPS)
               - (p + 0.5 * q) * (log_pq - _LN2))

    if needs_mask:
        # Ragged tail: drop rows past the true N. Column-shaped iota/compare,
        # broadcast along lanes by the select. Keep jnp.where (select), NOT a
        # multiply, so NaN/Inf computed from padded garbage rows is discarded.
        s = pl.program_id(0)
        row0 = (s * tiles_per_shard + i) * tile_rows
        rows = row0 + lax.broadcasted_iota(jnp.int32, (tile_rows, 1), 0)
        contrib = jnp.where(rows < n_rows, contrib, 0.0)

    # Pure-VPU accumulation into the full, aligned (8, D) resident block:
    # groups of 8 rows map exactly onto sublane tiles (no XLU reduce, no
    # masked sub-tile stores).
    o_ref[...] += contrib.reshape(-1, 8, contrib.shape[-1]).sum(axis=0)


def _default_num_shards():
    """2 only where a 'parallel' grid axis can reach a second TensorCore."""
    try:
        kind = jax.devices()[0].device_kind.lower()
    except Exception:
        return 1
    if "v7" in kind:
        return 2                            # 2 TCs per chip
    if ("v4" in kind or "v5p" in kind) and "lite" not in kind:
        return 2                            # megacore
    return 1                                # v5e / v6e: 1 TC -> shards are pure overhead


def _pick_tile_rows(n_rows, d, in_itemsize, vmem_limit_bytes):
    # Per tile row: 2 inputs x 2 pipeline buffers at the input dtype plus
    # ~6 f32-wide temporaries inside the kernel.
    budget = vmem_limit_bytes // 2
    bytes_per_row = d * (4 * in_itemsize + 6 * 4)
    tile_rows = max(8, budget // max(bytes_per_row, 1))
    # 512-1024 rows already sit at ~85% of the HBM roofline; larger tiles only
    # add VMEM pressure / spill risk.
    tile_rows = min(tile_rows, 1024)
    tile_rows = max(8, (tile_rows // 8) * 8)      # sublane multiple
    n_pad8 = ((n_rows + 7) // 8) * 8
    return int(min(tile_rows, n_pad8))            # don't tile past the problem


def js_div_loss(p, q, *, num_shards=None, tile_rows=None):
    assert p.shape == q.shape and p.ndim == 2
    n, d = p.shape
    in_itemsize = max(jnp.dtype(p.dtype).itemsize, jnp.dtype(q.dtype).itemsize)

    # Generation-aware but conservative VMEM budget (<= 48 MiB: safe within the
    # 64 MiB/core VMEM on v7x even with both TensorCores active).
    try:
        vmem_cap = int(pltpu.get_tpu_info().vmem_capacity_bytes)
    except Exception:
        vmem_cap = 64 * 1024 * 1024
    vmem_limit = int(min(max(vmem_cap // 2, 8 * 1024 * 1024), 48 * 1024 * 1024))

    if num_shards is None:
        num_shards = _default_num_shards()
    num_shards = max(1, int(num_shards))

    if tile_rows is None:
        tile_rows = _pick_tile_rows(n, d, in_itemsize, vmem_limit)
    tile_rows = max(8, (int(tile_rows) // 8) * 8)

    # Make the tile count an exact multiple of num_shards (re-balancing
    # tile_rows if necessary) so there are no wasted / re-DMAed clamped steps.
    num_tiles = -(-n // tile_rows)
    if num_tiles < num_shards:
        num_shards = 1
    elif num_tiles % num_shards != 0:
        balanced_tiles = -(-num_tiles // num_shards) * num_shards
        rows_needed = -(-n // balanced_tiles)
        tile_rows = max(8, -(-rows_needed // 8) * 8)
        num_tiles = -(-n // tile_rows)
        if num_tiles % num_shards != 0:
            num_shards = 1
    tiles_per_shard = num_tiles // num_shards
    needs_mask = (num_tiles * tile_rows) != n

    def in_index_map(s, i):
        return (s * tiles_per_shard + i, 0)

    kernel = functools.partial(
        _jsdiv_kernel, n_rows=n, tile_rows=tile_rows,
        tiles_per_shard=tiles_per_shard, needs_mask=needs_mask)

    cost = pl.CostEstimate(
        flops=10 * n * d,
        transcendentals=3 * n * d,
        bytes_accessed=2 * n * d * in_itemsize + num_shards * 8 * d * 4,
    )

    partials = pl.pallas_call(
        kernel,
        out_shape=jax.ShapeDtypeStruct((num_shards * 8, d), jnp.float32),
        grid_spec=pltpu.PrefetchScalarGridSpec(
            num_scalar_prefetch=0,
            grid=(num_shards, tiles_per_shard),
            in_specs=[
                pl.BlockSpec((tile_rows, d), in_index_map),
                pl.BlockSpec((tile_rows, d), in_index_map),
            ],
            out_specs=pl.BlockSpec((8, d), lambda s, i: (s, 0)),
        ),
        compiler_params=pltpu.CompilerParams(
            dimension_semantics=("parallel", "arbitrary"),
            vmem_limit_bytes=vmem_limit,
        ),
        cost_estimate=cost,
    )(p, q)

    # Tiny finalization in XLA: cross-lane reduce of the per-shard partial
    # slabs and the division by N (matches the reference's / p.size(0)).
    return jnp.sum(partials) / jnp.float32(n)


def _reference(p, q):
    p = p.astype(jnp.float32)
    q = q.astype(jnp.float32)
    m = (p + q) / 2.0

    def kl(a, b):
        return jnp.sum(a * jnp.log((a + EPS) / b)) / a.shape[0]

    return kl(p, m) + kl(q, m) / 2.0


if __name__ == "__main__":
    key = jax.random.PRNGKey(0)
    k1, k2, k3, k4, k5, k6 = jax.random.split(key, 6)

    # 1) Small probability-like rows (softmax over the last axis).
    N, D = 16, 128
    p = jax.nn.softmax(jax.random.normal(k1, (N, D), dtype=jnp.float32), axis=-1)
    q = jax.nn.softmax(jax.random.normal(k2, (N, D), dtype=jnp.float32), axis=-1)
    out = jax.block_until_ready(js_div_loss(p, q))
    ref = _reference(p, q)
    assert jnp.allclose(out, ref, rtol=2e-4, atol=1e-5), (out, ref)

    # 2) Ragged N (masked tail) with a shard request that cannot divide the
    #    tile count -> exercises the fall-back-to-1-shard path (no clamp waste).
    N2, D2 = 44, 128
    p2 = jax.nn.softmax(jax.random.normal(k3, (N2, D2), dtype=jnp.float32), axis=-1)
    q2 = jax.nn.softmax(jax.random.normal(k4, (N2, D2), dtype=jnp.float32), axis=-1)
    out2 = jax.block_until_ready(js_div_loss(p2, q2, num_shards=2, tile_rows=16))
    ref2 = _reference(p2, q2)
    assert jnp.allclose(out2, ref2, rtol=2e-4, atol=1e-5), (out2, ref2)

    # 3) Even split across 2 shards (per-shard resident accumulator blocks),
    #    i.e. the megacore / v7x path; still correct (serial) on 1-TC chips.
    N3, D3 = 64, 128
    p3 = jax.nn.softmax(jax.random.normal(k5, (N3, D3), dtype=jnp.float32), axis=-1)
    q3 = jax.nn.softmax(jax.random.normal(k6, (N3, D3), dtype=jnp.float32), axis=-1)
    out3 = jax.block_until_ready(js_div_loss(p3, q3, num_shards=2, tile_rows=16))
    ref3 = _reference(p3, q3)
    assert jnp.allclose(out3, ref3, rtol=2e-4, atol=1e-5), (out3, ref3)

    print("KERNEL_OK")
</pallas_src>

<mosaic_0001>
module attributes {stable_mosaic.version = 11 : i64} {
  func.func @_jsdiv_kernel(%arg0: i32, %arg1: i32, %arg2: memref<16x128xf32, #tpu.memory_space<vmem>>, %arg3: memref<16x128xf32, #tpu.memory_space<vmem>>, %arg4: memref<8x128xf32, #tpu.memory_space<vmem>>) attributes {dimension_semantics = [#tpu.dimension_semantics<parallel>, #tpu.dimension_semantics<arbitrary>], iteration_bounds = array<i64: 1, 1>, scalar_prefetch = 0 : i64, scratch_operands = 0 : i64, tpu.core_type = #tpu.core_type<tc>, window_params = [{transform_indices = @transform_0, window_bounds = array<i64: 16, 128>}, {transform_indices = @transform_1, window_bounds = array<i64: 16, 128>}, {transform_indices = @transform_2, window_bounds = array<i64: 8, 128>}]} {
    %c0_i32 = arith.constant 0 : i32
    %0 = arith.cmpi eq, %arg1, %c0_i32 : i32
    %1 = arith.extui %0 : i1 to i32
    %c0_i32_0 = arith.constant 0 : i32
    %2 = arith.cmpi ne, %1, %c0_i32_0 : i32
    scf.if %2 {
      %cst_13 = arith.constant 0.000000e+00 : f32
      %30 = vector.broadcast %cst_13 : f32 to vector<8x128xf32>
      %c0_14 = arith.constant 0 : index
      %c0_15 = arith.constant 0 : index
      %31 = vector.load %arg4[%c0_14, %c0_15] : memref<8x128xf32, #tpu.memory_space<vmem>>, vector<8x128xf32>
      tpu.vector_store %arg4[%c0_14, %c0_15], %30 {strides = array<i32>} : memref<8x128xf32, #tpu.memory_space<vmem>>, vector<8x128xf32>,
    } else {
    }
    %c0 = arith.constant 0 : index
    %c0_1 = arith.constant 0 : index
    %3 = vector.load %arg2[%c0, %c0_1] : memref<16x128xf32, #tpu.memory_space<vmem>>, vector<16x128xf32>
    %c0_2 = arith.constant 0 : index
    %c0_3 = arith.constant 0 : index
    %4 = vector.load %arg3[%c0_2, %c0_3] : memref<16x128xf32, #tpu.memory_space<vmem>>, vector<16x128xf32>
    %5 = arith.addf %3, %4 : vector<16x128xf32>
    %6 = math.log %5 : vector<16x128xf32>
    %cst = arith.constant 9.99999974E-6 : f32
    %7 = vector.broadcast %cst : f32 to vector<16x128xf32>
    %8 = arith.addf %3, %7 : vector<16x128xf32>
    %9 = math.log %8 : vector<16x128xf32>
    %10 = arith.mulf %3, %9 : vector<16x128xf32>
    %cst_4 = arith.constant 5.000000e-01 : f32
    %11 = vector.broadcast %cst_4 : f32 to vector<16x128xf32>
    %12 = arith.mulf %11, %4 : vector<16x128xf32>
    %cst_5 = arith.constant 9.99999974E-6 : f32
    %13 = vector.broadcast %cst_5 : f32 to vector<16x128xf32>
    %14 = arith.addf %4, %13 : vector<16x128xf32>
    %15 = math.log %14 : vector<16x128xf32>
    %16 = arith.mulf %12, %15 : vector<16x128xf32>
    %17 = arith.addf %10, %16 : vector<16x128xf32>
    %cst_6 = arith.constant 5.000000e-01 : f32
    %18 = vector.broadcast %cst_6 : f32 to vector<16x128xf32>
    %19 = arith.mulf %18, %4 : vector<16x128xf32>
    %20 = arith.addf %3, %19 : vector<16x128xf32>
    %cst_7 = arith.constant 0.693147182 : f32
    %21 = vector.broadcast %cst_7 : f32 to vector<16x128xf32>
    %22 = arith.subf %6, %21 : vector<16x128xf32>
    %23 = arith.mulf %20, %22 : vector<16x128xf32>
    %24 = arith.subf %17, %23 : vector<16x128xf32>
    %c0_8 = arith.constant 0 : index
    %c0_9 = arith.constant 0 : index
    %25 = vector.load %arg4[%c0_8, %c0_9] : memref<8x128xf32, #tpu.memory_space<vmem>>, vector<8x128xf32>
    %26 = vector.shape_cast %24 : vector<16x128xf32> to vector<2x8x128xf32>
    %cst_10 = arith.constant dense<0.000000e+00> : vector<8x128xf32>
    %27 = vector.multi_reduction <add>, %26, %cst_10 [0] : vector<2x8x128xf32> to vector<8x128xf32>
    %28 = arith.addf %25, %27 : vector<8x128xf32>
    %c0_11 = arith.constant 0 : index
    %c0_12 = arith.constant 0 : index
    %29 = vector.load %arg4[%c0_11, %c0_12] : memref<8x128xf32, #tpu.memory_space<vmem>>, vector<8x128xf32>
    tpu.vector_store %arg4[%c0_11, %c0_12], %28 {strides = array<i32>} : memref<8x128xf32, #tpu.memory_space<vmem>>, vector<8x128xf32>,
    return
  }
  func.func @transform_0(%arg0: i32, %arg1: i32) -> (i32, i32) {
    %c1_i32 = arith.constant 1 : i32
    %0 = arith.muli %arg0, %c1_i32 : i32
    %1 = arith.addi %0, %arg1 : i32
    %c0_i32 = arith.constant 0 : i32
    %c0_i32_0 = arith.constant 0 : i32
    return %1, %c0_i32 : i32, i32
  }
  func.func @transform_1(%arg0: i32, %arg1: i32) -> (i32, i32) {
    %c1_i32 = arith.constant 1 : i32
    %0 = arith.muli %arg0, %c1_i32 : i32
    %1 = arith.addi %0, %arg1 : i32
    %c0_i32 = arith.constant 0 : i32
    %c0_i32_0 = arith.constant 0 : i32
    return %1, %c0_i32 : i32, i32
  }
  func.func @transform_2(%arg0: i32, %arg1: i32) -> (i32, i32) {
    %c0_i32 = arith.constant 0 : i32
    %c0_i32_0 = arith.constant 0 : i32
    return %arg0, %c0_i32 : i32, i32
  }
}

</mosaic_0001>

<bundles_post_ra>
// kernel: tpu_custom_call.1
= control target key start
LH: loop header
LB: loop body
LE: loop exit
PB: predicated region body
PF: predicated region fallthrough
CT: control target
= control target key end

     0   :  { %7 = vsyncpa [#allocation3], 0  ;;  %s230_s0 = inlined_call_operand.hbm [shape: f32[16,128], index: 0, kind: input, shape index: {}]   ;;  %s231_s1 = inlined_call_operand.hbm [shape: f32[16,128], index: 1, kind: input, shape index: {}]   ;;  %s232_s2 = inlined_call_operand.hbm [shape: f32[8,128], index: 2, kind: output, shape index: {}]  }
   0x1   :  { %8 = vsyncpa [#allocation6], 0 }
   0x2   :  { %9 = vsyncpa [#allocation4], 0  ;;  %s201_s9 = smov [#allocation2]  }
   0x3   :  { %s19_s10 = sshll.u32 %s201_s9, 4  ;;  %s20_s10 = int_to_ptr.vmem [resolvable:$true] %s19_s10 }
   0x4   :  { %s143_s11 = scalar_lea.vmem %s20_s10, 256  ;;  %p148_p1 = scmp.lt.s32.totalorder %s20_s10, %s20_s10 }
   0x5   :  { %p144_p0 = scmp.ne.s32.totalorder %s20_s10, %s143_s11  ;;  %p149_p2 = scmp.lt.s32.totalorder %s143_s11, %s143_s11 }
   0x7   :  { %p150_p3 = por %p149_p2, %p148_p1 }
   0x9   :  { %p151_p4 = pnand %p150_p3, %p144_p0 }
   0xb   :  { %154 = shalt.err (!%p151_p4)
}
   0xc   :  { %s202_s12 = smov 128   ;;  %s203_s13 = smov 8  }
   0xd   :  { %25 = dma.hbm_to_vmem [thread:$0]  %s230_s0, 256, %s20_s10, [#allocation3], %s202_s12, %s202_s12, %s203_s13  }
   0xe   :  { %s204_s16 = smov [#allocation5]  }
   0xf   :  { %s35_s17 = sshll.u32 %s204_s16, 4  ;;  %s36_s17 = int_to_ptr.vmem [resolvable:$true] %s35_s17 }
  0x10   :  { %s163_s18 = scalar_lea.vmem %s36_s17, 256  ;;  %p168_p6 = scmp.lt.s32.totalorder %s36_s17, %s36_s17 }
  0x11   :  { %p164_p5 = scmp.ne.s32.totalorder %s36_s17, %s163_s18  ;;  %p169_p7 = scmp.lt.s32.totalorder %s163_s18, %s163_s18 }
  0x13   :  { %p170_p8 = por %p169_p7, %p168_p6 }
  0x15   :  { %p171_p9 = pnand %p170_p8, %p164_p5 }
  0x17   :  { %174 = shalt.err (!%p171_p9)
}
  0x18   :  { %41 = dma.hbm_to_vmem [thread:$0]  %s231_s1, 256, %s36_s17, [#allocation6], %s202_s12, %s202_s12, %s203_s13  }
  0x19   :  { %195 = dma.done.wait [#allocation3], 256  }
  0x1a   :  { %196 = vsyncadd [#allocation3], 4294967040 }
  0x1b   :  { %197 = dma.done.wait [#allocation6], 256  }
  0x1c   :  { %198 = vsyncadd [#allocation6], 4294967040  ;;  %v57_v0 = vld [vmem:[#allocation2] sm:$0xff]  ;;  %v58_v1 = vld [vmem:[#allocation2 + $0x8] sm:$0xff]  ;;  %s205_s0 = smov [#allocation7]  }
  0x1d   :  { %v59_v2 = vld [vmem:[#allocation5] sm:$0xff]  ;;  %v60_v3 = vld [vmem:[#allocation5 + $0x8] sm:$0xff]  ;;  %v67_v5 = vadd.f32 1e-05, %v57_v0  ;;  %v68_v7 = vadd.f32 1e-05, %v58_v1 }
  0x1e   :  { %v61_v4 = vadd.f32 %v59_v2, %v57_v0  ;;  %v62_v6 = vadd.f32 %v60_v3, %v58_v1  ;;  %v77_v8 = vadd.f32 1e-05, %v59_v2  ;;  %v78_v9 = vadd.f32 1e-05, %v60_v3  ;;  %s105_s1 = sshll.u32 %s205_s0, 4  ;;  %s106_s1 = int_to_ptr.vmem [resolvable:$true] %s105_s1 }
  0x1f   :  { %v75_v10 = vmul.f32 0.5, %v59_v2  ;;  %v76_v12 = vmul.f32 0.5, %v60_v3  ;;  %s175_s21 = scalar_lea.vmem %s106_s1, 128  ;;  %p180_p11 = scmp.lt.s32.totalorder %s106_s1, %s106_s1 }
  0x20   :  { %123 = vlog2.f32 %v61_v4  ;;  %p176_p10 = scmp.ne.s32.totalorder %s106_s1, %s175_s21  ;;  %p181_p12 = scmp.lt.s32.totalorder %s175_s21, %s175_s21 }
  0x21   :  { %125 = vlog2.f32 %v62_v6  ;;  %v87_v19 = vadd.f32 %v75_v10, %v57_v0  ;;  %v88_v23 = vadd.f32 %v76_v12, %v58_v1 }
  0x22   :  { %127 = vlog2.f32 %v67_v5  ;;  %p182_p13 = por %p181_p12, %p180_p11 }
  0x23   :  { %129 = vlog2.f32 %v68_v7 }
  0x24   :  { %131 = vlog2.f32 %v77_v8  ;;  %p183_p0 = pnand %p182_p13, %p176_p10 }
  0x25   :  { %133 = vlog2.f32 %v78_v9 }
  0x2d   :  { %v124_v11 = vpop.eup %123 }
  0x2e   :  { %v126_v13 = vpop.eup %125  ;;  %v64_v14 = vmul.f32 0.6931472, %v124_v11 }
  0x2f   :  { %v128_v15 = vpop.eup %127  ;;  %v66_v16 = vmul.f32 0.6931472, %v126_v13 }
  0x30   :  { %v130_v17 = vpop.eup %129  ;;  %v70_v18 = vmul.f32 0.6931472, %v128_v15  ;;  %v115_v20 = vadd.f32 -0.6931472, %v64_v14 }
  0x31   :  { %v132_v21 = vpop.eup %131  ;;  %v72_v22 = vmul.f32 0.6931472, %v130_v17  ;;  %v116_v24 = vadd.f32 -0.6931472, %v66_v16 }
  0x32   :  { %v134_v25 = vpop.eup %133  ;;  %v73_v26 = vmul.f32 %v70_v18, %v57_v0  ;;  %v80_v27 = vmul.f32 0.6931472, %v132_v21  ;;  %v91_v31 = vmul.f32 %v115_v20, %v87_v19 }
  0x33   :  { %v74_v28 = vmul.f32 %v72_v22, %v58_v1  ;;  %v82_v29 = vmul.f32 0.6931472, %v134_v25  ;;  %v92_v33 = vmul.f32 %v116_v24, %v88_v23 }
  0x34   :  { %v83_v30 = vmul.f32 %v80_v27, %v75_v10 }
  0x35   :  { %v84_v32 = vmul.f32 %v82_v29, %v76_v12 }
  0x36   :  { %v85_v34 = vadd.f32 %v83_v30, %v73_v26 }
  0x37   :  { %v86_v35 = vadd.f32 %v84_v32, %v74_v28 }
  0x38   :  { %v93_v36 = vsub.f32 %v85_v34, %v91_v31 }
  0x39   :  { %v94_v37 = vsub.f32 %v86_v35, %v92_v33 }
  0x3b   :  { %v96_v38 = vadd.f32 %v94_v37, %v93_v36 }
  0x3d   :  { %98 = vst [vmem:[#allocation7] sm:$0xff] %v96_v38 }
  0x3e   :  { %186 = shalt.err (!%p183_p0)
}
  0x3f   :  { %108 = dma.vmem_to_hbm [thread:$0]  %s106_s1, 128, %s232_s2, [#allocation4]  }
  0x40   :  { %199 = dma.done.wait [#allocation4], 128  }
  0x41   :  { %200 = vsyncadd [#allocation4], 4294967168 }
  0x42   :  { %112 = vsyncpa [#allocation3], 1 }
  0x43   :  { %113 = vsyncpa [#allocation6], 1 }
  0x44   :  { %114 = vsyncpa [#allocation4], 1 }

</bundles_post_ra>
